<compile_context>
chip_gen: v7x
topology: tpu7x:2x2x1
jax: 0.10.0
libtpu: 0.0.40
codegen_flags: <defaults>
</compile_context>

<pallas_src>
import numpy as np
import jax
import jax.numpy as jnp
from jax.experimental import pallas as pl
from jax.experimental.pallas import tpu as pltpu

MFCC_TOTAL = 13
CONV_KW = 10        # kernel width of conv_mfcc / conv_delta / conv_delta_delta
CONV_STRIDE = 5
C1_KH, C1_KW = 3, 5  # conv_1 kernel (height = number of concatenated streams)
C1_STRIDE = 2
FC1_IN = 28


# ----------------------------------------------------------------------------
# The fused kernel: whole forward pass in one invocation, everything in VMEM.
# ----------------------------------------------------------------------------
def _fused_net_kernel(x_ref, w3_ref, b3_ref, k1_ref, bc1_ref, sel_ref,
                      wfc1_ref, bfc1_ref, wfc2_ref, bfc2_ref, o_ref):
    # (1) three stride-5 convs as one matmul with a block-diagonal weight:
    #     p[n*Wo + w, s] = conv_s output at (batch n, width w)  -- s = mfcc/delta/dd
    p = jnp.dot(x_ref[...], w3_ref[...], preferred_element_type=jnp.float32)
    p = p + b3_ref[...]                                   # (N*Wo, 3)

    # (2) conv_1, stage 1: contract the 3-row "height" (torch cat dim=2) with K1
    q = jnp.dot(p, k1_ref[...], preferred_element_type=jnp.float32)   # (N*Wo, 5)

    # (3) conv_1, stage 2: stride-2 window sum over width, expressed as
    #     matmuls with constant 0/1 selection matrices (gather-as-matmul).
    kw = k1_ref.shape[1]
    y1 = jnp.dot(sel_ref[0], q[:, 0:1], preferred_element_type=jnp.float32)
    for c in range(1, kw):                                # unrolled at trace time
        y1 = y1 + jnp.dot(sel_ref[c], q[:, c:c + 1],
                          preferred_element_type=jnp.float32)
    y1 = y1 + bc1_ref[...]                                # (28, 1) == .view(-1,28) as a column

    # (4) fc1 (Linear(28,10)) in column form, then fc2 (Linear(10,1)) + Sigmoid
    h = jnp.dot(wfc1_ref[...], y1, preferred_element_type=jnp.float32) + bfc1_ref[...]
    z = jnp.dot(wfc2_ref[...], h, preferred_element_type=jnp.float32) + bfc2_ref[...]
    o_ref[...] = jax.nn.sigmoid(z)                        # (1, 1)


# ----------------------------------------------------------------------------
# Parameter init (PyTorch layouts) and one-time packing into kernel operands.
# ----------------------------------------------------------------------------
def init_params(key):
    ks = jax.random.split(key, 12)

    def uni(k, shape, fan_in):
        bound = 1.0 / (fan_in ** 0.5)
        return jax.random.uniform(k, shape, jnp.float32, -bound, bound)

    kk = MFCC_TOTAL * CONV_KW
    return dict(
        w_mfcc=uni(ks[0], (MFCC_TOTAL, CONV_KW), kk), b_mfcc=uni(ks[1], (1,), kk),
        w_delta=uni(ks[2], (MFCC_TOTAL, CONV_KW), kk), b_delta=uni(ks[3], (1,), kk),
        w_dd=uni(ks[4], (MFCC_TOTAL, CONV_KW), kk), b_dd=uni(ks[5], (1,), kk),
        w_c1=uni(ks[6], (C1_KH, C1_KW), C1_KH * C1_KW), b_c1=uni(ks[7], (1,), C1_KH * C1_KW),
        w_fc1=uni(ks[8], (10, FC1_IN), FC1_IN), b_fc1=uni(ks[9], (10,), FC1_IN),
        w_fc2=uni(ks[10], (1, 10), 10), b_fc2=uni(ks[11], (1,), 10),
    )


def prepare_params(params):
    """One-time reshape/transpose/pack of PyTorch-layout params (not per call)."""
    f32 = jnp.float32
    k = MFCC_TOTAL * CONV_KW                              # 130
    w3 = jnp.zeros((3 * k, 3), f32)                       # block-diagonal conv weights
    w3 = w3.at[0 * k:1 * k, 0].set(params["w_mfcc"].astype(f32).reshape(-1))
    w3 = w3.at[1 * k:2 * k, 1].set(params["w_delta"].astype(f32).reshape(-1))
    w3 = w3.at[2 * k:3 * k, 2].set(params["w_dd"].astype(f32).reshape(-1))
    b3 = jnp.concatenate([params["b_mfcc"], params["b_delta"],
                          params["b_dd"]]).astype(f32).reshape(1, 3)
    return dict(
        w3=w3, b3=b3,
        k1=params["w_c1"].astype(f32),                    # (3, 5)
        bc1=params["b_c1"].astype(f32).reshape(1, 1),
        wfc1=params["w_fc1"].astype(f32),                 # (10, 28)
        bfc1=params["b_fc1"].astype(f32).reshape(-1, 1),  # (10, 1)
        wfc2=params["w_fc2"].astype(f32),                 # (1, 10)
        bfc2=params["b_fc2"].astype(f32).reshape(1, 1),
    )


# ----------------------------------------------------------------------------
# Trace-time constants / layout plumbing (cheap, fused by jit around the call).
# ----------------------------------------------------------------------------
def _conv1_selection(n_batch, w_feat, w_out):
    # sel[c, n*w_out + w2, n*w_feat + 2*w2 + c] = 1   (constant, shape-derived)
    sel = np.zeros((C1_KW, n_batch * w_out, n_batch * w_feat), np.float32)
    for n in range(n_batch):
        for w2 in range(w_out):
            for c in range(C1_KW):
                sel[c, n * w_out + w2, n * w_feat + C1_STRIDE * w2 + c] = 1.0
    return jnp.asarray(sel)


def _conv_patches(x, w_out):
    # x: (N, 1, 13, W) -> im2col rows (N*w_out, 130) via the shifted-chunk view
    # (kernel width 10 = 2 * stride 5, so window k = chunk k ++ chunk k+1).
    n, _, h, w = x.shape
    xc = x[:, 0].astype(jnp.float32).reshape(n, h, w // CONV_STRIDE, CONV_STRIDE)
    win = jnp.concatenate([xc[:, :, 0:w_out, :], xc[:, :, 1:w_out + 1, :]],
                          axis=3)                         # (N, 13, w_out, 10)
    return win.transpose(0, 2, 1, 3).reshape(n * w_out, h * CONV_KW)


@jax.jit
def net_forward(prepped, mfcc, delta, delta_delta):
    n, _, h, w = mfcc.shape
    if h != MFCC_TOTAL or w % CONV_STRIDE != 0:
        raise ValueError("expected inputs of shape (N, 1, 13, W) with W % 5 == 0")
    w_out = (w - CONV_KW) // CONV_STRIDE + 1              # width after the 13x10 convs
    w1_out = (w_out - C1_KW) // C1_STRIDE + 1             # width after conv_1
    if n * w1_out != FC1_IN:
        # The module's .view(-1, 28) / .squeeze(0) path requires N * w1_out == 28
        # (e.g. N=2, W=160), which is the configuration this fused kernel supports.
        raise ValueError("fused kernel requires N * w1_out == 28")

    x = jnp.concatenate([_conv_patches(mfcc, w_out),
                         _conv_patches(delta, w_out),
                         _conv_patches(delta_delta, w_out)], axis=1)   # (N*w_out, 390)
    sel = _conv1_selection(n, w_out, w1_out)              # compile-time constant

    out = pl.pallas_call(
        _fused_net_kernel,
        out_shape=jax.ShapeDtypeStruct((1, 1), jnp.float32),
        in_specs=[pl.BlockSpec(memory_space=pltpu.MemorySpace.VMEM)] * 10,
        out_specs=pl.BlockSpec(memory_space=pltpu.MemorySpace.VMEM),
    )(x, prepped["w3"], prepped["b3"], prepped["k1"], prepped["bc1"], sel,
      prepped["wfc1"], prepped["bfc1"], prepped["wfc2"], prepped["bfc2"])

    # torch: fc1 -> (1,10) -> squeeze(0) -> (10,) -> Linear(10,1) -> Sigmoid -> (1,)
    return out.reshape(1)


if __name__ == "__main__":
    key = jax.random.PRNGKey(0)
    pkey, k1, k2, k3 = jax.random.split(key, 4)
    params = init_params(pkey)
    prepped = prepare_params(params)

    # (2,1,13,160) -> conv(13,10,s5): (2,1,1,31) -> cat(dim=2): (2,1,3,31)
    # -> conv(3,5,s2): (2,1,1,14) -> view(-1,28): (1,28) -> fc1 -> squeeze -> fc2+sigmoid -> (1,)
    N, H, W = 2, MFCC_TOTAL, 160
    mfcc = jax.random.normal(k1, (N, 1, H, W), jnp.float32)
    delta = jax.random.normal(k2, (N, 1, H, W), jnp.float32)
    delta_delta = jax.random.normal(k3, (N, 1, H, W), jnp.float32)

    out = net_forward(prepped, mfcc, delta, delta_delta)
    out = jax.block_until_ready(out)
    assert out.shape == (1,) and out.dtype == jnp.float32
    print("KERNEL_OK")
</pallas_src>

<mosaic_0001>
module attributes {stable_mosaic.version = 11 : i64} {
  func.func @_fused_net_kernel(%arg0: memref<62x390xf32, #tpu.memory_space<vmem>>, %arg1: memref<390x3xf32, #tpu.memory_space<vmem>>, %arg2: memref<1x3xf32, #tpu.memory_space<vmem>>, %arg3: memref<3x5xf32, #tpu.memory_space<vmem>>, %arg4: memref<1x1xf32, #tpu.memory_space<vmem>>, %arg5: memref<5x28x62xf32, #tpu.memory_space<vmem>>, %arg6: memref<10x28xf32, #tpu.memory_space<vmem>>, %arg7: memref<10x1xf32, #tpu.memory_space<vmem>>, %arg8: memref<1x10xf32, #tpu.memory_space<vmem>>, %arg9: memref<1x1xf32, #tpu.memory_space<vmem>>, %arg10: memref<1x1xf32, #tpu.memory_space<vmem>>) attributes {dimension_semantics = [], scalar_prefetch = 0 : i64, scratch_operands = 0 : i64, tpu.core_type = #tpu.core_type<tc>} {
    %c0 = arith.constant 0 : index
    %c0_0 = arith.constant 0 : index
    %0 = vector.load %arg0[%c0, %c0_0] : memref<62x390xf32, #tpu.memory_space<vmem>>, vector<62x390xf32>
    %c0_1 = arith.constant 0 : index
    %c0_2 = arith.constant 0 : index
    %1 = vector.load %arg1[%c0_1, %c0_2] : memref<390x3xf32, #tpu.memory_space<vmem>>, vector<390x3xf32>
    %cst = arith.constant dense<0.000000e+00> : vector<62x3xf32>
    %2 = tpu.matmul %0, %1, %cst {dimension_numbers = #tpu.dot_dimension_numbers<[1], [0], [0], [1], [0, 0, 1, 1], [], []>} : vector<62x390xf32>, vector<390x3xf32>, vector<62x3xf32> -> vector<62x3xf32>
    %c0_3 = arith.constant 0 : index
    %c0_4 = arith.constant 0 : index
    %3 = vector.load %arg2[%c0_3, %c0_4] : memref<1x3xf32, #tpu.memory_space<vmem>>, vector<1x3xf32>
    %4 = vector.broadcast %3 : vector<1x3xf32> to vector<62x3xf32>
    %5 = arith.addf %2, %4 : vector<62x3xf32>
    %c0_5 = arith.constant 0 : index
    %c0_6 = arith.constant 0 : index
    %6 = vector.load %arg3[%c0_5, %c0_6] : memref<3x5xf32, #tpu.memory_space<vmem>>, vector<3x5xf32>
    %cst_7 = arith.constant dense<0.000000e+00> : vector<62x5xf32>
    %7 = tpu.matmul %5, %6, %cst_7 {dimension_numbers = #tpu.dot_dimension_numbers<[1], [0], [0], [1], [0, 0, 1, 1], [], []>} : vector<62x3xf32>, vector<3x5xf32>, vector<62x5xf32> -> vector<62x5xf32>
    %c0_8 = arith.constant 0 : index
    %c0_9 = arith.constant 0 : index
    %c0_10 = arith.constant 0 : index
    %8 = vector.load %arg5[%c0_8, %c0_9, %c0_10] : memref<5x28x62xf32, #tpu.memory_space<vmem>>, vector<1x28x62xf32>
    %9 = vector.shape_cast %8 : vector<1x28x62xf32> to vector<28x62xf32>
    %10 = vector.extract_strided_slice %7 {offsets = [0, 0], sizes = [62, 1], strides = [1, 1]} : vector<62x5xf32> to vector<62x1xf32>
    %cst_11 = arith.constant dense<0.000000e+00> : vector<28x1xf32>
    %11 = tpu.matmul %9, %10, %cst_11 {dimension_numbers = #tpu.dot_dimension_numbers<[1], [0], [0], [1], [0, 0, 1, 1], [], []>} : vector<28x62xf32>, vector<62x1xf32>, vector<28x1xf32> -> vector<28x1xf32>
    %c1 = arith.constant 1 : index
    %c0_12 = arith.constant 0 : index
    %c0_13 = arith.constant 0 : index
    %12 = vector.load %arg5[%c1, %c0_12, %c0_13] : memref<5x28x62xf32, #tpu.memory_space<vmem>>, vector<1x28x62xf32>
    %13 = vector.shape_cast %12 : vector<1x28x62xf32> to vector<28x62xf32>
    %14 = vector.extract_strided_slice %7 {offsets = [0, 1], sizes = [62, 1], strides = [1, 1]} : vector<62x5xf32> to vector<62x1xf32>
    %cst_14 = arith.constant dense<0.000000e+00> : vector<28x1xf32>
    %15 = tpu.matmul %13, %14, %cst_14 {dimension_numbers = #tpu.dot_dimension_numbers<[1], [0], [0], [1], [0, 0, 1, 1], [], []>} : vector<28x62xf32>, vector<62x1xf32>, vector<28x1xf32> -> vector<28x1xf32>
    %16 = arith.addf %11, %15 : vector<28x1xf32>
    %c2 = arith.constant 2 : index
    %c0_15 = arith.constant 0 : index
    %c0_16 = arith.constant 0 : index
    %17 = vector.load %arg5[%c2, %c0_15, %c0_16] : memref<5x28x62xf32, #tpu.memory_space<vmem>>, vector<1x28x62xf32>
    %18 = vector.shape_cast %17 : vector<1x28x62xf32> to vector<28x62xf32>
    %19 = vector.extract_strided_slice %7 {offsets = [0, 2], sizes = [62, 1], strides = [1, 1]} : vector<62x5xf32> to vector<62x1xf32>
    %cst_17 = arith.constant dense<0.000000e+00> : vector<28x1xf32>
    %20 = tpu.matmul %18, %19, %cst_17 {dimension_numbers = #tpu.dot_dimension_numbers<[1], [0], [0], [1], [0, 0, 1, 1], [], []>} : vector<28x62xf32>, vector<62x1xf32>, vector<28x1xf32> -> vector<28x1xf32>
    %21 = arith.addf %16, %20 : vector<28x1xf32>
    %c3 = arith.constant 3 : index
    %c0_18 = arith.constant 0 : index
    %c0_19 = arith.constant 0 : index
    %22 = vector.load %arg5[%c3, %c0_18, %c0_19] : memref<5x28x62xf32, #tpu.memory_space<vmem>>, vector<1x28x62xf32>
    %23 = vector.shape_cast %22 : vector<1x28x62xf32> to vector<28x62xf32>
    %24 = vector.extract_strided_slice %7 {offsets = [0, 3], sizes = [62, 1], strides = [1, 1]} : vector<62x5xf32> to vector<62x1xf32>
    %cst_20 = arith.constant dense<0.000000e+00> : vector<28x1xf32>
    %25 = tpu.matmul %23, %24, %cst_20 {dimension_numbers = #tpu.dot_dimension_numbers<[1], [0], [0], [1], [0, 0, 1, 1], [], []>} : vector<28x62xf32>, vector<62x1xf32>, vector<28x1xf32> -> vector<28x1xf32>
    %26 = arith.addf %21, %25 : vector<28x1xf32>
    %c4 = arith.constant 4 : index
    %c0_21 = arith.constant 0 : index
    %c0_22 = arith.constant 0 : index
    %27 = vector.load %arg5[%c4, %c0_21, %c0_22] : memref<5x28x62xf32, #tpu.memory_space<vmem>>, vector<1x28x62xf32>
    %28 = vector.shape_cast %27 : vector<1x28x62xf32> to vector<28x62xf32>
    %29 = vector.extract_strided_slice %7 {offsets = [0, 4], sizes = [62, 1], strides = [1, 1]} : vector<62x5xf32> to vector<62x1xf32>
    %cst_23 = arith.constant dense<0.000000e+00> : vector<28x1xf32>
    %30 = tpu.matmul %28, %29, %cst_23 {dimension_numbers = #tpu.dot_dimension_numbers<[1], [0], [0], [1], [0, 0, 1, 1], [], []>} : vector<28x62xf32>, vector<62x1xf32>, vector<28x1xf32> -> vector<28x1xf32>
    %31 = arith.addf %26, %30 : vector<28x1xf32>
    %c0_24 = arith.constant 0 : index
    %c0_25 = arith.constant 0 : index
    %32 = vector.load %arg4[%c0_24, %c0_25] : memref<1x1xf32, #tpu.memory_space<vmem>>, vector<1x1xf32>
    %33 = vector.broadcast %32 : vector<1x1xf32> to vector<28x1xf32>
    %34 = arith.addf %31, %33 : vector<28x1xf32>
    %c0_26 = arith.constant 0 : index
    %c0_27 = arith.constant 0 : index
    %35 = vector.load %arg6[%c0_26, %c0_27] : memref<10x28xf32, #tpu.memory_space<vmem>>, vector<10x28xf32>
    %cst_28 = arith.constant dense<0.000000e+00> : vector<10x1xf32>
    %36 = tpu.matmul %35, %34, %cst_28 {dimension_numbers = #tpu.dot_dimension_numbers<[1], [0], [0], [1], [0, 0, 1, 1], [], []>} : vector<10x28xf32>, vector<28x1xf32>, vector<10x1xf32> -> vector<10x1xf32>
    %c0_29 = arith.constant 0 : index
    %c0_30 = arith.constant 0 : index
    %37 = vector.load %arg7[%c0_29, %c0_30] : memref<10x1xf32, #tpu.memory_space<vmem>>, vector<10x1xf32>
    %38 = arith.addf %36, %37 : vector<10x1xf32>
    %c0_31 = arith.constant 0 : index
    %c0_32 = arith.constant 0 : index
    %39 = vector.load %arg8[%c0_31, %c0_32] : memref<1x10xf32, #tpu.memory_space<vmem>>, vector<1x10xf32>
    %cst_33 = arith.constant dense<0.000000e+00> : vector<1x1xf32>
    %40 = tpu.matmul %39, %38, %cst_33 {dimension_numbers = #tpu.dot_dimension_numbers<[1], [0], [0], [1], [0, 0, 1, 1], [], []>} : vector<1x10xf32>, vector<10x1xf32>, vector<1x1xf32> -> vector<1x1xf32>
    %c0_34 = arith.constant 0 : index
    %c0_35 = arith.constant 0 : index
    %41 = vector.load %arg9[%c0_34, %c0_35] : memref<1x1xf32, #tpu.memory_space<vmem>>, vector<1x1xf32>
    %42 = arith.addf %40, %41 : vector<1x1xf32>
    %43 = arith.negf %42 : vector<1x1xf32>
    %44 = math.exp %43 : vector<1x1xf32>
    %cst_36 = arith.constant 1.000000e+00 : f32
    %45 = vector.broadcast %cst_36 : f32 to vector<1x1xf32>
    %46 = arith.addf %45, %44 : vector<1x1xf32>
    %47 = arith.divf %45, %46 : vector<1x1xf32>
    %c0_37 = arith.constant 0 : index
    %c0_38 = arith.constant 0 : index
    %48 = vector.load %arg10[%c0_37, %c0_38] : memref<1x1xf32, #tpu.memory_space<vmem>>, vector<1x1xf32>
    tpu.vector_store %arg10[%c0_37, %c0_38], %47 {strides = array<i32>} : memref<1x1xf32, #tpu.memory_space<vmem>>, vector<1x1xf32>,
    return
  }
}

</mosaic_0001>

<bundles_post_ra>
// kernel: net_forward.1
= control target key start
LH: loop header
LB: loop body
LE: loop exit
PB: predicated region body
PF: predicated region fallthrough
CT: control target
= control target key end

     0   :  { %s2469_s0 = inlined_call_operand.vmem [shape: f32[62,390], index: 0, kind: input, shape index: {}]   ;;  %s2470_s1 = inlined_call_operand.vmem [shape: f32[390,3], index: 1, kind: input, shape index: {}]   ;;  %s2471_s2 = inlined_call_operand.vmem [shape: f32[1,3], index: 2, kind: input, shape index: {}]   ;;  %s2472_s3 = inlined_call_operand.vmem [shape: f32[3,5], index: 3, kind: input, shape index: {}]   ;;  %s2473_s4 = inlined_call_operand.<no memory space> [shape: f32[1,1], index: 4, kind: input, shape index: {}]   ;;  %s2474_s5 = inlined_call_operand.vmem [shape: f32[5,28,62], index: 5, kind: input, shape index: {}]   ;;  %s2475_s6 = inlined_call_operand.vmem [shape: f32[10,28], index: 6, kind: input, shape index: {}]   ;;  %s2476_s7 = inlined_call_operand.vmem [shape: f32[10,1], index: 7, kind: input, shape index: {}]   ;;  %s2477_s8 = inlined_call_operand.vmem [shape: f32[1,10], index: 8, kind: input, shape index: {}]   ;;  %s2478_s10 = inlined_call_operand.hbm [shape: f32[1,1], index: 10, kind: output, shape index: {}]   ;;  %s2479_s9 = inlined_call_operand.<no memory space> [shape: f32[1,1], index: 9, kind: input, shape index: {}]  }
   0x1   :  { %v15_v0 = vstv %s2473_s4  ;;  %v17_v1 = vstv %s2479_s9 }
   0x2   :  { %16 = vst [vmem:[#allocation2] sm:$0x1] %v15_v0  ;;  %18 = vst [vmem:[#allocation3] sm:$0x1] %v17_v1 }
   0x3   :  { %v88_v2 = vld [vmem:[%s2470_s1 + $0x80] sm:$0xff]  ;;  %v89_v3 = vld [vmem:[%s2470_s1 + $0x88] sm:$0xff]  ;;  %v90_v7 = vld [vmem:[%s2470_s1 + $0x90] sm:$0xff] }
   0x4   :  { %v72_v4 = vld [vmem:[%s2470_s1] sm:$0xff]  ;;  %v1680_v5 = vpack.c.bf16 %v89_v3, %v88_v2  ;;  %v73_v6 = vld [vmem:[%s2470_s1 + $0x8] sm:$0xff]  ;;  %v91_v8 = vld [vmem:[%s2470_s1 + $0x98] sm:$0xff] }
   0x5   :  { %v1682_v9 = vpack.c.bf16 %v73_v6, %v72_v4  ;;  %v1684_v10 = vpack.c.bf16 %v91_v8, %v90_v7  ;;  %v74_v11 = vld [vmem:[%s2470_s1 + $0x10] sm:$0xff]  ;;  %v75_v12 = vld [vmem:[%s2470_s1 + $0x18] sm:$0xff]  ;;  %v92_v13 = vld [vmem:[%s2470_s1 + $0xa0] sm:$0xff] }
   0x6   :  { %1681 = vmatprep.subr.bf16.mxu0 %v1680_v5  ;;  %v93_v14 = vld [vmem:[%s2470_s1 + $0xa8] sm:$0xff]  ;;  %v1686_v15 = vpack.c.bf16 %v75_v12, %v74_v11  ;;  %v76_v17 = vld [vmem:[%s2470_s1 + $0x20] sm:$0xff]  ;;  %v94_v19 = vld [vmem:[%s2470_s1 + $0xb0] sm:$0xff] }
   0x7   :  { %1683 = vmatpush3.bf16.msra.mxu0 %v1682_v9  ;;  %v1688_v16 = vpack.c.bf16 %v93_v14, %v92_v13  ;;  %v77_v18 = vld [vmem:[%s2470_s1 + $0x28] sm:$0xff]  ;;  %v95_v20 = vld [vmem:[%s2470_s1 + $0xb8] sm:$0xff]  ;;  %v78_v23 = vld [vmem:[%s2470_s1 + $0x30] sm:$0xff] }
   0x8   :  { %1685 = vmatprep.subr.bf16.mxu0 %v1684_v10  ;;  %v1690_v21 = vpack.c.bf16 %v77_v18, %v76_v17  ;;  %v1692_v22 = vpack.c.bf16 %v95_v20, %v94_v19  ;;  %v79_v24 = vld [vmem:[%s2470_s1 + $0x38] sm:$0xff]  ;;  %v96_v25 = vld [vmem:[%s2470_s1 + $0xc0] sm:$0xff]  ;;  %v97_v26 = vld [vmem:[%s2470_s1 + $0xc8] sm:$0xff] }
   0x9   :  { %v41_v27 = vld [vmem:[%s2469_s0 + $0x8] sm:$0xff]  ;;  %v1694_v28 = vpack.c.bf16 %v79_v24, %v78_v23  ;;  %v1696_v29 = vpack.c.bf16 %v97_v26, %v96_v25  ;;  %v80_v30 = vld [vmem:[%s2470_s1 + $0x40] sm:$0xff]  ;;  %v98_v32 = vld [vmem:[%s2470_s1 + $0xd0] sm:$0xff] }
   0xa   :  { %221 = vmatprep.mubr.f32.mxu0 %v41_v27  ;;  %v81_v31 = vld [vmem:[%s2470_s1 + $0x48] sm:$0xff]  ;;  %v99_v33 = vld [vmem:[%s2470_s1 + $0xd8] sm:$0xff]  ;;  %v82_v36 = vld [vmem:[%s2470_s1 + $0x50] sm:$0xff] }
   0xb   :  { %1687 = vmatpush3.bf16.msra.mxu0 %v1686_v15  ;;  %v1698_v34 = vpack.c.bf16 %v81_v31, %v80_v30  ;;  %v1700_v35 = vpack.c.bf16 %v99_v33, %v98_v32  ;;  %v83_v37 = vld [vmem:[%s2470_s1 + $0x58] sm:$0xff]  ;;  %v100_v38 = vld [vmem:[%s2470_s1 + $0xe0] sm:$0xff]  ;;  %v101_v39 = vld [vmem:[%s2470_s1 + $0xe8] sm:$0xff] }
   0xc   :  { %1689 = vmatprep.subr.bf16.mxu0 %v1688_v16  ;;  %v1702_v40 = vpack.c.bf16 %v83_v37, %v82_v36  ;;  %v1704_v41 = vpack.c.bf16 %v101_v39, %v100_v38  ;;  %v84_v42 = vld [vmem:[%s2470_s1 + $0x60] sm:$0xff]  ;;  %v85_v43 = vld [vmem:[%s2470_s1 + $0x68] sm:$0xff]  ;;  %v102_v44 = vld [vmem:[%s2470_s1 + $0xf0] sm:$0xff] }
   0xd   :  { %v103_v45 = vld [vmem:[%s2470_s1 + $0xf8] sm:$0xff]  ;;  %v1706_v46 = vpack.c.bf16 %v85_v43, %v84_v42  ;;  %v86_v48 = vld [vmem:[%s2470_s1 + $0x70] sm:$0xff] }
   0xe   :  { %v1708_v47 = vpack.c.bf16 %v103_v45, %v102_v44  ;;  %v87_v49 = vld [vmem:[%s2470_s1 + $0x78] sm:$0xff] }
   0xf   :  { %1691 = vmatpush3.bf16.msra.mxu0 %v1690_v21 }
  0x10   :  { %1693 = vmatprep.subr.bf16.mxu0 %v1692_v22 }
  0x13   :  { %1695 = vmatpush3.bf16.msra.mxu0 %v1694_v28 }
  0x14   :  { %1697 = vmatprep.subr.bf16.mxu0 %v1696_v29 }
  0x17   :  { %1699 = vmatpush3.bf16.msra.mxu0 %v1698_v34 }
  0x18   :  { %1701 = vmatprep.subr.bf16.mxu0 %v1700_v35 }
  0x1b   :  { %1703 = vmatpush3.bf16.msra.mxu0 %v1702_v40 }
  0x1c   :  { %1705 = vmatprep.subr.bf16.mxu0 %v1704_v41 }
  0x1d   :  { %19 = vsyncpa [#allocation5], 0  ;;  %v1710_v50 = vpack.c.bf16 %v87_v49, %v86_v48  ;;  %v104_v51 = vld [vmem:[%s2470_s1 + $0x100] sm:$0xff]  ;;  %v105_v52 = vld [vmem:[%s2470_s1 + $0x108] sm:$0xff]  ;;  %v1973_v55 = vmov 0.0|0.0   ;;  %vm128_vm0 = vcmask 48128  }
  0x1e   :  { %v40_v53 = vld [vmem:[%s2469_s0] sm:$0xff]  ;;  %v1713_v54 = vpack.c.bf16 %v105_v52, %v104_v51  ;;  %v45_v56 = vld [vmem:[%s2469_s0 + $0x28] sm:$0xff]  ;;  %v106_v57 = vld [vmem:[%s2470_s1 + $0x110] sm:$0xff]  ;;  %v1974_v28 = vmov 0.0   ;;  %vm153_vm1 = vcmask 1045504   ;;  %vm393_vm2 = vcmask 1042432  }
  0x1f   :  { %1707 = vmatpush3.bf16.msra.mxu0 %v1706_v46  ;;  %v107_v58 = vld [vmem:[%s2470_s1 + $0x118] sm:$0xff]  ;;  %v44_v60 = vld [vmem:[%s2469_s0 + $0x20] sm:$0xff]  ;;  %v49_v61 = vld [vmem:[%s2469_s0 + $0x48] sm:$0xff]  ;;  %vm368_vm3 = vcmask 23552   ;;  %s1976_s9 = smov 126   ;;  %vm542_vm4 = vcmask 506880  }
  0x20   :  { %1709 = vmatprep.subr.bf16.mxu0 %v1708_v47  ;;  %v1716_v59 = vpack.c.bf16 %v107_v58, %v106_v57  ;;  %v108_v62 = vld [vmem:[%s2470_s1 + $0x120] sm:$0xff]  ;;  %v109_v63 = vld [vmem:[%s2470_s1 + $0x128] sm:$0xff]  ;;  %v110_v3 = vld [vmem:[%s2470_s1 + $0x130] sm:$0xff]  ;;  %s1977_s26 = smov 125   ;;  %s1978_s27 = smov 124   ;;  %vm1979_vm5 = vmmov 1  }
  0x21   :  { %v1719_v0 = vpack.c.bf16 %v109_v63, %v108_v62  ;;  %v48_v1 = vld [vmem:[%s2469_s0 + $0x40] sm:$0xff]  ;;  %v53_v2 = vld [vmem:[%s2469_s0 + $0x68] sm:$0xff]  ;;  %v111_v4 = vld [vmem:[%s2470_s1 + $0x138] sm:$0xff]  ;;  %vm1149_vm7 = vcmask 228352   ;;  %vm1156_vm8 = vcmask 1043456   ;;  %vm1980_vm10 = vmmov 0  }
  0x22   :  { %v1722_v5 = vpack.c.bf16 %v111_v4, %v110_v3  ;;  %v52_v6 = vld [vmem:[%s2469_s0 + $0x60] sm:$0xff]  ;;  %v57_v7 = vld [vmem:[%s2469_s0 + $0x88] sm:$0xff]  ;;  %v114_v13 = vld [vmem:[%s2470_s1 + $0x150] sm:$0xff]  ;;  %vm1241_vm11 = vcmask 1041408   ;;  %vm1237_vm13 = vcmask 80896   ;;  %vm1321_vm14 = vcmask 0  }
  0x23   :  { %1711 = vmatpush3.bf16.msra.mxu0 %v1710_v50  ;;  %v112_v8 = vld [vmem:[%s2470_s1 + $0x140] sm:$0xff]  ;;  %v113_v9 = vld [vmem:[%s2470_s1 + $0x148] sm:$0xff]  ;;  %v115_v14 = vld [vmem:[%s2470_s1 + $0x158] sm:$0xff] }
  0x24   :  { %1712 = vmatprep.subr.bf16.mxu0 %v1973_v55  ;;  %v1725_v10 = vpack.c.bf16 %v113_v9, %v112_v8  ;;  %v56_v11 = vld [vmem:[%s2469_s0 + $0x80] sm:$0xff]  ;;  %v61_v12 = vld [vmem:[%s2469_s0 + $0xa8] sm:$0xff]  ;;  %v1728_v15 = vpack.c.bf16 %v115_v14, %v114_v13  ;;  %v118_v23 = vld [vmem:[%s2470_s1 + $0x170] sm:$0xff] }
  0x25   :  { %v60_v16 = vld [vmem:[%s2469_s0 + $0xa0] sm:$0xff]  ;;  %v65_v17 = vld [vmem:[%s2469_s0 + $0xc8] sm:$0xff]  ;;  %v119_v24 = vld [vmem:[%s2470_s1 + $0x178] sm:$0xff] }
  0x26   :  { %222 = vmatmul.mubr.f32.vlgmr.msra.gmra.mrb[0].mxu0 %v40_v53  ;;  %v116_v18 = vld [vmem:[%s2470_s1 + $0x160] sm:$0xff]  ;;  %v117_v19 = vld [vmem:[%s2470_s1 + $0x168] sm:$0xff]  ;;  %v1734_v25 = vpack.c.bf16 %v119_v24, %v118_v23  ;;  %v43_v27 = vld [vmem:[%s2469_s0 + $0x18] sm:$0xff] }
  0x27   :  { %1714 = vmatpush1.bf16.msra.mxu0 %v1713_v54  ;;  %226 = vmatprep.mubr.f32.mxu0 %v45_v56  ;;  %v1731_v20 = vpack.c.bf16 %v117_v19, %v116_v18  ;;  %v64_v21 = vld [vmem:[%s2469_s0 + $0xc0] sm:$0xff]  ;;  %v69_v22 = vld [vmem:[%s2469_s0 + $0xe8] sm:$0x3f]  ;;  %v42_v30 = vld [vmem:[%s2469_s0 + $0x10] sm:$0xff] }
  0x28   :  { %1715 = vmatprep.subr.bf16.mxu0 %v1973_v55  ;;  %v68_v26 = vld [vmem:[%s2469_s0 + $0xe0] sm:$0x3f]  ;;  %v47_v31 = vld [vmem:[%s2469_s0 + $0x38] sm:$0xff]  ;;  %v46_v32 = vld [vmem:[%s2469_s0 + $0x30] sm:$0xff] }
  0x29   :  { %v120_v29 = vld [vmem:[%s2470_s1 + $0x180] sm:$0x3f]  ;;  %v51_v33 = vld [vmem:[%s2469_s0 + $0x58] sm:$0xff]  ;;  %v50_v34 = vld [vmem:[%s2469_s0 + $0x50] sm:$0xff] }
  0x2a   :  { %227 = vmatmul.mubr.f32.gmra.mrb[2].mxu0 %v44_v60  ;;  %v55_v35 = vld [vmem:[%s2469_s0 + $0x78] sm:$0xff]  ;;  %v54_v36 = vld [vmem:[%s2469_s0 + $0x70] sm:$0xff]  ;;  %v367_v45 = vld [vmem:[%s2472_s3] sm:$0x7] }
  0x2b   :  { %1717 = vmatpush1.bf16.msra.mxu0 %v1716_v59  ;;  %231 = vmatprep.mubr.f32.mxu0 %v49_v61  ;;  %v59_v37 = vld [vmem:[%s2469_s0 + $0x98] sm:$0xff]  ;;  %v58_v38 = vld [vmem:[%s2469_s0 + $0x90] sm:$0xff]  ;;  %vm2330_vm6 = vmpackc.low %vm153_vm1, %vm1979_vm5 }
  0x2c   :  { %1718 = vmatprep.subr.bf16.mxu0 %v1973_v55  ;;  %v63_v39 = vld [vmem:[%s2469_s0 + $0xb8] sm:$0xff]  ;;  %v62_v40 = vld [vmem:[%s2469_s0 + $0xb0] sm:$0xff]  ;;  %1538 = vmatprep.subr.msk.mxu1 %vm393_vm2, %v367_v45  ;;  %vm1831_vm9 = vmpackc.low %vm1156_vm8, %vm1979_vm5 }
  0x2d   :  { %v67_v41 = vld [vmem:[%s2469_s0 + $0xd8] sm:$0xff]  ;;  %v66_v42 = vld [vmem:[%s2469_s0 + $0xd0] sm:$0xff]  ;;  %1539 = vmatpush3.msk.msra.mxu1 %vm393_vm2, %v367_v45  ;;  %vm1838_vm12 = vmpackc.low %vm1241_vm11, %vm1979_vm5 }
  0x2e   :  { %232 = vmatmul.mubr.f32.gmra.mrb[4].mxu0 %v48_v1  ;;  %v71_v43 = vld [vmem:[%s2469_s0 + $0xf8] sm:$0x3f]  ;;  %v70_v44 = vld [vmem:[%s2469_s0 + $0xf0] sm:$0x3f] }
  0x2f   :  { %1720 = vmatpush1.bf16.msra.mxu0 %v1719_v0  ;;  %236 = vmatprep.mubr.f32.mxu0 %v53_v2 }
  0x30   :  { %1721 = vmatprep.subr.bf16.mxu0 %v1973_v55 }
  0x32   :  { %237 = vmatmul.mubr.f32.gmra.mrb[6].mxu0 %v52_v6 }
  0x33   :  { %1723 = vmatpush1.bf16.msra.mxu0 %v1722_v5  ;;  %241 = vmatprep.mubr.f32.mxu0 %v57_v7  ;;  %v1337_v7 = vld [vmem:[%s2471_s2] ss:$0 sm:$0xff]  ;;  %s1975_s2 = smov 127  }
  0x34   :  { %1724 = vmatprep.subr.bf16.mxu0 %v1973_v55 }
  0x36   :  { %242 = vmatmul.mubr.f32.gmra.mrb[8].mxu0 %v56_v11 }
  0x37   :  { %1726 = vmatpush1.bf16.msra.mxu0 %v1725_v10  ;;  %246 = vmatprep.mubr.f32.mxu0 %v61_v12 }
  0x38   :  { %1727 = vmatprep.subr.bf16.mxu0 %v1973_v55 }
  0x3a   :  { %247 = vmatmul.mubr.f32.gmra.mrb[10].mxu0 %v60_v16 }
  0x3b   :  { %1729 = vmatpush1.bf16.msra.mxu0 %v1728_v15  ;;  %251 = vmatprep.mubr.f32.mxu0 %v65_v17 }
  0x3c   :  { %1730 = vmatprep.subr.bf16.mxu0 %v1973_v55 }
  0x3e   :  { %252 = vmatmul.mubr.f32.gmra.mrb[12].mxu0 %v64_v21 }
  0x3f   :  { %1732 = vmatpush1.bf16.msra.mxu0 %v1731_v20  ;;  %256 = vmatprep.mubr.f32.mxu0 %v69_v22 }
  0x40   :  { %1733 = vmatprep.subr.bf16.mxu0 %v1973_v55 }
  0x42   :  { %257 = vmatmul.mubr.f32.gmra.mrb[14].mxu0 %v68_v26 }
  0x43   :  { %1735 = vmatpush1.bf16.msra.mxu0 %v1734_v25  ;;  %1339 = vmatprep.mubr.msk.f32.mxu0 %vm128_vm0, %v43_v27 }
  0x44   :  { %294 = vmatprep.subr.mxu0 %v1974_v28 }
  0x47   :  { %1338 = vmatpush1.msk.msra.mxu0 %vm153_vm1, %v120_v29 }
  0x48   :  { %327 = vmatmul.mubr.f32.vlgmr.msra.gmra.mrb[16].mxu0 %v42_v30 }
  0x49   :  { %1340 = vmatprep.mubr.msk.f32.mxu0 %vm128_vm0, %v47_v31 }
  0x4c   :  { %332 = vmatmul.mubr.f32.gmra.mrb[18].mxu0 %v46_v32 }
  0x4d   :  { %1341 = vmatprep.mubr.msk.f32.mxu0 %vm128_vm0, %v51_v33 }
  0x50   :  { %337 = vmatmul.mubr.f32.gmra.mrb[20].mxu0 %v50_v34 }
  0x51   :  { %1342 = vmatprep.mubr.msk.f32.mxu0 %vm128_vm0, %v55_v35 }
  0x54   :  { %342 = vmatmul.mubr.f32.gmra.mrb[22].mxu0 %v54_v36 }
  0x55   :  { %1343 = vmatprep.mubr.msk.f32.mxu0 %vm128_vm0, %v59_v37 }
  0x58   :  { %347 = vmatmul.mubr.f32.gmra.mrb[24].mxu0 %v58_v38 }
  0x59   :  { %1344 = vmatprep.mubr.msk.f32.mxu0 %vm128_vm0, %v63_v39 }
  0x5c   :  { %352 = vmatmul.mubr.f32.gmra.mrb[26].mxu0 %v62_v40 }
  0x5d   :  { %1345 = vmatprep.mubr.msk.f32.mxu0 %vm128_vm0, %v67_v41 }
  0x60   :  { %357 = vmatmul.mubr.f32.gmra.mrb[28].mxu0 %v66_v42 }
  0x61   :  { %1346 = vmatprep.mubr.msk.f32.mxu0 %vm128_vm0, %v71_v43 }
  0x64   :  { %362 = vmatmul.mubr.f32.gmra.mrb[30].mxu0 %v70_v44 }
  0xf9   :  { %v1436_v46 = vpop.f32.mrb[0].mxu0 }
  0xfa   :  { %v1437_v47 = vpop.f32.mrb[1].mxu0 }
  0xfb   :  { %v1438_v48 = vadd.f32 %v1437_v47, %v1436_v46 }
  0xfd   :  { %v1439_v49 = vpop.f32.mrb[2].mxu0  ;;  %v224_v8 = vadd.f32 %v1438_v48, %v1337_v7 }
  0xfe   :  { %v1440_v50 = vpop.f32.mrb[3].mxu0 }
  0xff   :  { %v1441_v51 = vadd.f32 %v1440_v50, %v1439_v49 }
 0x101   :  { %v1442_v52 = vpop.f32.mrb[4].mxu0  ;;  %v229_v12 = vadd.f32 %v1441_v51, %v1337_v7 }
 0x102   :  { %v1443_v53 = vpop.f32.mrb[5].mxu0 }
 0x103   :  { %v1444_v54 = vadd.f32 %v1443_v53, %v1442_v52  ;;  %v1356_v53 = vld [vmem:[%s2474_s5 + $0x20] sm:$0xff] }
 0x105   :  { %v1445_v56 = vpop.f32.mrb[6].mxu0  ;;  %v234_v16 = vadd.f32 %v1444_v54, %v1337_v7 }
 0x106   :  { %v1446_v57 = vpop.f32.mrb[7].mxu0 }
 0x107   :  { %v1447_v58 = vadd.f32 %v1446_v57, %v1445_v56 }
 0x109   :  { %v1448_v59 = vpop.f32.mrb[8].mxu0  ;;  %v239_v20 = vadd.f32 %v1447_v58, %v1337_v7 }
 0x10a   :  { %v1449_v60 = vpop.f32.mrb[9].mxu0 }
 0x10b   :  { %v1450_v61 = vadd.f32 %v1449_v60, %v1448_v59 }
 0x10d   :  { %v1451_v62 = vpop.f32.mrb[10].mxu0  ;;  %v244_v24 = vadd.f32 %v1450_v61, %v1337_v7 }
 0x10e   :  { %v1452_v63 = vpop.f32.mrb[11].mxu0 }
 0x10f   :  { %v1453_v0 = vadd.f32 %v1452_v63, %v1451_v62 }
 0x111   :  { %v1454_v1 = vpop.f32.mrb[12].mxu0  ;;  %v249_v29 = vadd.f32 %v1453_v0, %v1337_v7 }
 0x112   :  { %v1455_v2 = vpop.f32.mrb[13].mxu0 }
 0x113   :  { %v1456_v3 = vadd.f32 %v1455_v2, %v1454_v1 }
 0x115   :  { %v1457_v4 = vpop.f32.mrb[14].mxu0  ;;  %v254_v33 = vadd.f32 %v1456_v3, %v1337_v7 }
 0x116   :  { %v1458_v5 = vpop.f32.mrb[15].mxu0 }
 0x117   :  { %v1459_v6 = vadd.f32 %v1458_v5, %v1457_v4 }
 0x119   :  { %v259_v37 = vadd.f32 %v1459_v6, %v1337_v7 }
 0x11b   :  { %v328_v9 = vpop.f32.mrb[16].mxu0 }
 0x11c   :  { %v329_v10 = vadd.f32 %v328_v9, %v224_v8  ;;  %v330_v11 = vpop.f32.mrb[17].mxu0 }
 0x11e   :  { %1540 = vmatprep.mubr.msk.f32.mxu1 %vm368_vm3, %v329_v10  ;;  %v1145_v10 = vld [vmem:[%s2475_s6] sm:$0xff] }
 0x11f   :  { %v333_v13 = vpop.f32.mrb[18].mxu0 }
 0x120   :  { %v334_v14 = vadd.f32 %v333_v13, %v229_v12  ;;  %v335_v15 = vpop.f32.mrb[19].mxu0  ;;  %v1357_v12 = vld [vmem:[%s2474_s5 + $0x28] sm:$0xff]  ;;  %v1358_v13 = vld [vmem:[%s2474_s5 + $0x30] sm:$0xff] }
 0x121   :  { %v502_v15 = vld [vmem:[%s2474_s5] sm:$0xff] }
 0x122   :  { %1541 = vmatmul.mubr.msk.f32.vlgmr.msra.gmra.mrb[0].mxu1 %vm368_vm3, %v334_v14  ;;  %v1359_v14 = vld [vmem:[%s2474_s5 + $0x38] sm:$0xf] }
 0x123   :  { %v338_v17 = vpop.f32.mrb[20].mxu0 }
 0x124   :  { %v339_v18 = vadd.f32 %v338_v17, %v234_v16  ;;  %v340_v19 = vpop.f32.mrb[21].mxu0 }
 0x126   :  { %1543 = vmatprep.mubr.msk.f32.mxu1 %vm368_vm3, %v339_v18 }
 0x127   :  { %v343_v21 = vpop.f32.mrb[22].mxu0 }
 0x128   :  { %v344_v22 = vadd.f32 %v343_v21, %v239_v20  ;;  %v345_v23 = vpop.f32.mrb[23].mxu0 }
 0x12a   :  { %1544 = vmatmul.mubr.msk.f32.gmra.mrb[2].mxu1 %vm368_vm3, %v344_v22 }
 0x12b   :  { %v348_v25 = vpop.f32.mrb[24].mxu0 }
 0x12c   :  { %v349_v26 = vadd.f32 %v348_v25, %v244_v24  ;;  %v350_v27 = vpop.f32.mrb[25].mxu0  ;;  %v503_v24 = vld [vmem:[%s2474_s5 + $0x8] sm:$0xff]  ;;  %v504_v25 = vld [vmem:[%s2474_s5 + $0x10] sm:$0xff] }
 0x12e   :  { %1546 = vmatprep.mubr.msk.f32.mxu1 %vm368_vm3, %v349_v26 }
 0x12f   :  { %v353_v30 = vpop.f32.mrb[26].mxu0 }
 0x130   :  { %v354_v31 = vadd.f32 %v353_v30, %v249_v29  ;;  %v355_v32 = vpop.f32.mrb[27].mxu0 }
 0x131   :  { %v1370_v32 = vld [vmem:[%s2474_s5 + $0x40] sm:$0xff] }
 0x132   :  { %1547 = vmatmul.mubr.msk.f32.gmra.mrb[4].mxu1 %vm368_vm3, %v354_v31  ;;  %v505_v31 = vld [vmem:[%s2474_s5 + $0x18] sm:$0xf] }
 0x133   :  { %v358_v34 = vpop.f32.mrb[28].mxu0 }
 0x134   :  { %v359_v35 = vadd.f32 %v358_v34, %v254_v33  ;;  %v360_v36 = vpop.f32.mrb[29].mxu0 }
 0x136   :  { %1549 = vmatprep.mubr.msk.f32.mxu1 %vm368_vm3, %v359_v35 }
 0x137   :  { %v363_v38 = vpop.f32.mrb[30].mxu0 }
 0x138   :  { %v364_v39 = vadd.f32 %v363_v38, %v259_v37  ;;  %v365_v40 = vpop.f32.mrb[31].mxu0 }
 0x13a   :  { %1550 = vmatmul.mubr.msk.f32.gmra.mrb[6].mxu1 %vm368_vm3, %v364_v39 }
 0x13b   :  { %1568 = vmatprep.mubr.msk.f32.mxu1 %vm542_vm4, %v1356_v53 }
 0x1f5   :  { %v1542_v41 = vpop.f32.mrb[0].mxu1 }
 0x1f6   :  { %v463_v42 = vpop.f32.mrb[1].mxu1 }
 0x1f7   :  { %v1865_v43 = vpack.i.bf16 %v1542_v41, %v463_v42  ;;  %v2318_v44 = vpack.c.bf16 %v1542_v41, %v463_v42 }
 0x1f9   :  { %1866 = vrot.lane.b32.xlu0 %v1865_v43, %s1975_s2 }
 0x1fd   :  { %v1545_v45 = vpop.f32.mrb[2].mxu1 }
 0x1fe   :  { %v473_v46 = vpop.f32.mrb[3].mxu1 }
 0x1ff   :  { %v1870_v47 = vpack.i.bf16 %v1545_v45, %v473_v46  ;;  %v2320_v48 = vpack.c.bf16 %v1545_v45, %v473_v46  ;;  %v1371_v45 = vld [vmem:[%s2474_s5 + $0x48] sm:$0xff]  ;;  %v1372_v46 = vld [vmem:[%s2474_s5 + $0x50] sm:$0xff] }
 0x201   :  { %1871 = vrot.lane.b32.xlu0 %v1870_v47, %s1975_s2 }
 0x205   :  { %1886 = vrot.lane.b32.xlu0 %v1865_v43, %s1976_s9  ;;  %v1548_v49 = vpop.f32.mrb[4].mxu1 }
 0x206   :  { %v483_v50 = vpop.f32.mrb[5].mxu1 }
 0x207   :  { %v1895_v51 = vpack.i.bf16 %v1548_v49, %v483_v50  ;;  %v2322_v52 = vpack.c.bf16 %v1548_v49, %v483_v50 }
 0x209   :  { %1896 = vrot.lane.b32.xlu0 %v1895_v51, %s1976_s9  ;;  %1876 = vrot.lane.b32.xlu1 %v1895_v51, %s1975_s2 }
 0x20d   :  { %1906 = vrot.lane.b32.xlu0 %v1865_v43, %s1977_s26  ;;  %v1551_v54 = vpop.f32.mrb[6].mxu1 }
 0x20e   :  { %v493_v56 = vpop.f32.mrb[7].mxu1 }
 0x20f   :  { %v1880_v57 = vpack.i.bf16 %v1551_v54, %v493_v56  ;;  %v1766_v58 = vpack.c.bf16 %v1551_v54, %v493_v56 }
 0x211   :  { %1916 = vrot.lane.b32.xlu0 %v1895_v51, %s1977_s26  ;;  %1881 = vrot.lane.b32.xlu1 %v1880_v57, %s1975_s2 }
 0x215   :  { %1926 = vrot.lane.b32.xlu0 %v1865_v43, %s1978_s27  ;;  %1891 = vrot.lane.b32.xlu1 %v1870_v47, %s1976_s9 }
 0x219   :  { %1936 = vrot.lane.b32.xlu0 %v1895_v51, %s1978_s27  ;;  %1901 = vrot.lane.b32.xlu1 %v1880_v57, %s1976_s9  ;;  %v1373_v51 = vld [vmem:[%s2474_s5 + $0x58] sm:$0xf] }
 0x21d   :  { %1911 = vrot.lane.b32.xlu1 %v1870_v47, %s1977_s26 }
 0x221   :  { %1921 = vrot.lane.b32.xlu1 %v1880_v57, %s1977_s26 }
 0x225   :  { %1931 = vrot.lane.b32.xlu1 %v1870_v47, %s1978_s27 }
 0x229   :  { %1941 = vrot.lane.b32.xlu1 %v1880_v57, %s1978_s27 }
 0x26b   :  { %v1867_v59 = vpop.permute.xlu0 %1866 }
 0x26c   :  { %v1869_v60 = vunpack.i.h.bf16 %v1867_v59  ;;  %v1868_v61 = vunpack.i.l.bf16 %v1867_v59 }
 0x26e   :  { %v1736_v62 = vpack.c.bf16 %v1869_v60, %v1868_v61 }
 0x270   :  { %1737 = vmatprep.subr.bf16.mxu1 %v1736_v62 }
 0x271   :  { %1739 = vmatpush3.bf16.msra.mxu1 %v1736_v62 }
 0x273   :  { %v1872_v63 = vpop.permute.xlu0 %1871 }
 0x274   :  { %v1874_v0 = vunpack.i.h.bf16 %v1872_v63  ;;  %v1873_v1 = vunpack.i.l.bf16 %v1872_v63 }
 0x276   :  { %v1740_v2 = vpack.c.bf16 %v1874_v0, %v1873_v1 }
 0x277   :  { %v1887_v16 = vpop.permute.xlu0 %1886 }
 0x278   :  { %1741 = vmatprep.subr.bf16.mxu1 %v1740_v2  ;;  %v1889_v17 = vunpack.i.h.bf16 %v1887_v16  ;;  %v1888_v18 = vunpack.i.l.bf16 %v1887_v16  ;;  %v1390_v16 = vld [vmem:[%s2474_s5 + $0x90] sm:$0xff] }
 0x279   :  { %1743 = vmatpush3.bf16.msra.mxu1 %v1740_v2  ;;  %v1380_v2 = vld [vmem:[%s2474_s5 + $0x68] sm:$0xff] }
 0x27a   :  { %v1772_v20 = vpack.c.bf16 %v1889_v17, %v1888_v18  ;;  %v1391_v17 = vld [vmem:[%s2474_s5 + $0x98] sm:$0xf]  ;;  %v1397_v18 = vld [vmem:[#allocation2] ss:$0 sm:$0xff] }
 0x27b   :  { %v1877_v3 = vpop.permute.xlu1 %1876  ;;  %v1897_v23 = vpop.permute.xlu0 %1896 }
 0x27c   :  { %v1879_v4 = vunpack.i.h.bf16 %v1877_v3  ;;  %v1878_v5 = vunpack.i.l.bf16 %v1877_v3  ;;  %v1899_v26 = vunpack.i.h.bf16 %v1897_v23  ;;  %v1898_v27 = vunpack.i.l.bf16 %v1897_v23  ;;  %v1381_v3 = vld [vmem:[%s2474_s5 + $0x70] sm:$0xff] }
 0x27e   :  { %v1744_v6 = vpack.c.bf16 %v1879_v4, %v1878_v5  ;;  %v1780_v33 = vpack.c.bf16 %v1899_v26, %v1898_v27 }
 0x27f   :  { %v1907_v36 = vpop.permute.xlu0 %1906 }
 0x280   :  { %1745 = vmatprep.subr.bf16.mxu1 %v1744_v6  ;;  %v1909_v37 = vunpack.i.h.bf16 %v1907_v36  ;;  %v1908_v38 = vunpack.i.l.bf16 %v1907_v36 }
 0x281   :  { %1747 = vmatpush3.bf16.msra.mxu1 %v1744_v6 }
 0x282   :  { %v1790_v41 = vpack.c.bf16 %v1909_v37, %v1908_v38  ;;  %v1236_v37 = vld [vmem:[#allocation3] sm:$0x1] }
 0x283   :  { %v1882_v7 = vpop.permute.xlu1 %1881 }
 0x284   :  { %v1884_v8 = vunpack.i.h.bf16 %v1882_v7  ;;  %v1883_v9 = vunpack.i.l.bf16 %v1882_v7 }
 0x286   :  { %v1748_v11 = vpack.c.bf16 %v1884_v8, %v1883_v9  ;;  %v1382_v8 = vld [vmem:[%s2474_s5 + $0x78] sm:$0xf]  ;;  %v1388_v9 = vld [vmem:[%s2474_s5 + $0x80] sm:$0xff] }
 0x287   :  { %v1892_v19 = vpop.permute.xlu1 %1891 }
 0x288   :  { %1750 = vmatprep.subr.msk.bf16.mxu1 %vm2330_vm6, %v1748_v11  ;;  %v1894_v21 = vunpack.i.h.bf16 %v1892_v19  ;;  %v1893_v22 = vunpack.i.l.bf16 %v1892_v19 }
 0x289   :  { %1753 = vmatpush3.bf16.msk.msra.mxu1 %vm2330_vm6, %v1748_v11 }
 0x28a   :  { %1755 = vmatprep.subr.bf16.mxu1 %v2318_v44  ;;  %v1776_v29 = vpack.c.bf16 %v1894_v21, %v1893_v22 }
 0x28b   :  { %v1902_v30 = vpop.permute.xlu1 %1901 }
 0x28c   :  { %1569 = vmatmul.mubr.msk.f32.vlgmr.msra.gmra.mrb[8].mxu1 %vm542_vm4, %v1357_v12  ;;  %v1904_v34 = vunpack.i.h.bf16 %v1902_v30  ;;  %v1903_v35 = vunpack.i.l.bf16 %v1902_v30  ;;  %v1146_v30 = vld [vmem:[%s2475_s6 + $0x8] sm:$0x3] }
 0x28d   :  { %1757 = vmatpush3.bf16.msra.mxu1 %v2318_v44  ;;  %1571 = vmatprep.mubr.msk.f32.mxu1 %vm542_vm4, %v1358_v13  ;;  %v1917_v44 = vpop.permute.xlu0 %1916 }
 0x28e   :  { %1759 = vmatprep.subr.bf16.mxu1 %v2320_v48  ;;  %v1784_v39 = vpack.c.bf16 %v1904_v34, %v1903_v35  ;;  %v1919_v47 = vunpack.i.h.bf16 %v1917_v44 }
 0x28f   :  { %v1912_v40 = vpop.permute.xlu1 %1911 }
 0x290   :  { %1572 = vmatmul.mubr.msk.f32.gmra.mrb[10].mxu1 %vm542_vm4, %v1359_v14  ;;  %v1914_v42 = vunpack.i.h.bf16 %v1912_v40  ;;  %v1913_v43 = vunpack.i.l.bf16 %v1912_v40 }
 0x291   :  { %1761 = vmatpush3.bf16.msra.mxu1 %v2320_v48  ;;  %1590 = vmatprep.mubr.msk.f32.mxu1 %vm542_vm4, %v502_v15  ;;  %v1918_v48 = vunpack.i.l.bf16 %v1917_v44  ;;  %v1927_v57 = vpop.permute.xlu0 %1926  ;;  %v1389_v15 = vld [vmem:[%s2474_s5 + $0x88] sm:$0xff] }
 0x292   :  { %1763 = vmatprep.subr.bf16.mxu1 %v2322_v52  ;;  %v1794_v49 = vpack.c.bf16 %v1914_v42, %v1913_v43  ;;  %v1928_v59 = vunpack.i.l.bf16 %v1927_v57 }
 0x293   :  { %v1922_v50 = vpop.permute.xlu1 %1921  ;;  %v1798_v53 = vpack.c.bf16 %v1919_v47, %v1918_v48 }
 0x294   :  { %v1924_v54 = vunpack.i.h.bf16 %v1922_v50  ;;  %v1923_v56 = vunpack.i.l.bf16 %v1922_v50 }
 0x295   :  { %1765 = vmatpush3.bf16.msra.mxu1 %v2322_v52  ;;  %v1379_v52 = vld [vmem:[%s2474_s5 + $0x60] sm:$0xff]  ;;  %v1937_v1 = vpop.permute.xlu0 %1936 }
 0x296   :  { %1768 = vmatprep.subr.msk.bf16.mxu1 %vm2330_vm6, %v1766_v58  ;;  %v1802_v60 = vpack.c.bf16 %v1924_v54, %v1923_v56  ;;  %v1939_v4 = vunpack.i.h.bf16 %v1937_v1  ;;  %v1938_v5 = vunpack.i.l.bf16 %v1937_v1 }
 0x297   :  { %v1932_v61 = vpop.permute.xlu1 %1931 }
 0x298   :  { %v1934_v63 = vunpack.i.h.bf16 %v1932_v61  ;;  %v1933_v0 = vunpack.i.l.bf16 %v1932_v61  ;;  %v1816_v11 = vpack.c.bf16 %v1939_v4, %v1938_v5 }
 0x299   :  { %1771 = vmatpush3.bf16.msk.msra.mxu1 %vm2330_vm6, %v1766_v58  ;;  %v1929_v58 = vunpack.i.h.bf16 %v1927_v57 }
 0x29a   :  { %1773 = vmatprep.subr.bf16.mxu1 %v1772_v20  ;;  %v1812_v6 = vpack.c.bf16 %v1934_v63, %v1933_v0 }
 0x29b   :  { %v1808_v62 = vpack.c.bf16 %v1929_v58, %v1928_v59  ;;  %v1942_v7 = vpop.permute.xlu1 %1941 }
 0x29c   :  { %1591 = vmatmul.mubr.msk.f32.vlgmr.msra.gmra.mrb[8].mxu1 %vm542_vm4, %v503_v24  ;;  %v1944_v12 = vunpack.i.h.bf16 %v1942_v7  ;;  %v1943_v13 = vunpack.i.l.bf16 %v1942_v7 }
 0x29d   :  { %1775 = vmatpush3.bf16.msra.mxu1 %v1772_v20  ;;  %1593 = vmatprep.mubr.msk.f32.mxu1 %vm542_vm4, %v504_v25 }
 0x29e   :  { %1777 = vmatprep.subr.bf16.mxu1 %v1776_v29  ;;  %v1820_v14 = vpack.c.bf16 %v1944_v12, %v1943_v13 }
 0x2a0   :  { %1594 = vmatmul.mubr.msk.f32.gmra.mrb[10].mxu1 %vm542_vm4, %v505_v31  ;;  %v1148_v31 = vld [vmem:[%s2476_s7 + $0x8] sm:$0x3] }
 0x2a1   :  { %1779 = vmatpush3.bf16.msra.mxu1 %v1776_v29  ;;  %1612 = vmatprep.mubr.msk.f32.mxu1 %vm542_vm4, %v1370_v32  ;;  %v1147_v32 = vld [vmem:[%s2476_s7] sm:$0xff]  ;;  %s1981_s7 = smov [#allocation4]  }
 0x2a2   :  { %1781 = vmatprep.subr.bf16.mxu1 %v1780_v33  ;;  %s1329_s2 = sshll.u32 %s1981_s7, 4  ;;  %s1330_s2 = int_to_ptr.vmem [resolvable:$true] %s1329_s2 }
 0x2a3   :  { %s1949_s9 = scalar_lea.vmem %s1330_s2, 16  ;;  %p1954_p1 = scmp.lt.s32.totalorder %s1330_s2, %s1330_s2 }
 0x2a4   :  { %p1950_p0 = scmp.ne.s32.totalorder %s1330_s2, %s1949_s9 }
 0x2a5   :  { %1783 = vmatpush3.bf16.msra.mxu1 %v1780_v33 }
 0x2a6   :  { %1786 = vmatprep.subr.msk.bf16.mxu1 %vm2330_vm6, %v1784_v39 }
 0x2a9   :  { %1789 = vmatpush3.bf16.msk.msra.mxu1 %vm2330_vm6, %v1784_v39 }
 0x2aa   :  { %1791 = vmatprep.subr.bf16.mxu1 %v1790_v41 }
 0x2ac   :  { %1613 = vmatmul.mubr.msk.f32.vlgmr.msra.gmra.mrb[8].mxu1 %vm542_vm4, %v1371_v45 }
 0x2ad   :  { %1793 = vmatpush3.bf16.msra.mxu1 %v1790_v41  ;;  %1615 = vmatprep.mubr.msk.f32.mxu1 %vm542_vm4, %v1372_v46 }
 0x2ae   :  { %1795 = vmatprep.subr.bf16.mxu1 %v1794_v49 }
 0x2b0   :  { %1616 = vmatmul.mubr.msk.f32.gmra.mrb[10].mxu1 %vm542_vm4, %v1373_v51 }
 0x2b1   :  { %1797 = vmatpush3.bf16.msra.mxu1 %v1794_v49  ;;  %1634 = vmatprep.mubr.msk.f32.mxu1 %vm542_vm4, %v1379_v52 }
 0x2b2   :  { %1799 = vmatprep.subr.bf16.mxu1 %v1798_v53 }
 0x2b5   :  { %1801 = vmatpush3.bf16.msra.mxu1 %v1798_v53 }
 0x2b6   :  { %1804 = vmatprep.subr.msk.bf16.mxu1 %vm2330_vm6, %v1802_v60 }
 0x2b9   :  { %1807 = vmatpush3.bf16.msk.msra.mxu1 %vm2330_vm6, %v1802_v60 }
 0x2ba   :  { %1809 = vmatprep.subr.bf16.mxu1 %v1808_v62 }
 0x2bc   :  { %1635 = vmatmul.mubr.msk.f32.vlgmr.msra.gmra.mrb[8].mxu1 %vm542_vm4, %v1380_v2 }
 0x2bd   :  { %1811 = vmatpush3.bf16.msra.mxu1 %v1808_v62  ;;  %1637 = vmatprep.mubr.msk.f32.mxu1 %vm542_vm4, %v1381_v3 }
 0x2be   :  { %1813 = vmatprep.subr.bf16.mxu1 %v1812_v6 }
 0x2c0   :  { %1638 = vmatmul.mubr.msk.f32.gmra.mrb[10].mxu1 %vm542_vm4, %v1382_v8 }
 0x2c1   :  { %1815 = vmatpush3.bf16.msra.mxu1 %v1812_v6  ;;  %1656 = vmatprep.mubr.msk.f32.mxu1 %vm542_vm4, %v1388_v9 }
 0x2c2   :  { %1817 = vmatprep.subr.bf16.mxu1 %v1816_v11 }
 0x2c5   :  { %1819 = vmatpush3.bf16.msra.mxu1 %v1816_v11 }
 0x2c6   :  { %1822 = vmatprep.subr.msk.bf16.mxu1 %vm2330_vm6, %v1820_v14 }
 0x2c9   :  { %1825 = vmatpush3.bf16.msk.msra.mxu1 %vm2330_vm6, %v1820_v14 }
 0x2cc   :  { %1657 = vmatmul.mubr.msk.f32.vlgmr.msra.gmra.mrb[8].mxu1 %vm542_vm4, %v1389_v15 }
 0x2cd   :  { %1659 = vmatprep.mubr.msk.f32.mxu1 %vm542_vm4, %v1390_v16 }
 0x2d0   :  { %1660 = vmatmul.mubr.msk.f32.gmra.mrb[10].mxu1 %vm542_vm4, %v1391_v17 }
 0x2d1   :  { %1670 = vmatprep.mubr.msk.f32.mxu1 %vm1149_vm7, %v1145_v10 }
 0x39f   :  { %v1658_v19 = vpop.f32.mrb[8].mxu1 }
 0x3a0   :  { %v1142_v20 = vadd.f32 %v1658_v19, %v1397_v18  ;;  %v1111_v21 = vpop.f32.mrb[9].mxu1 }
 0x3a1   :  { %v1141_v22 = vadd.f32 %v1397_v18, %v1111_v21 }
 0x3a3   :  { %v1826_v23 = vpack.c.bf16 %v1142_v20, %v1141_v22  ;;  %v1661_v24 = vpop.f32.mrb[10].mxu1 }
 0x3a4   :  { %v1144_v25 = vadd.f32 %v1661_v24, %v1397_v18  ;;  %v1121_v26 = vpop.f32.mrb[11].mxu1 }
 0x3a5   :  { %v1143_v27 = vadd.f32 %v1397_v18, %v1121_v26  ;;  %1827 = vmatprep.subr.bf16.mxu1 %v1826_v23 }
 0x3a6   :  { %1829 = vmatpush3.bf16.msra.mxu1 %v1826_v23 }
 0x3a7   :  { %v1830_v29 = vpack.c.bf16 %v1144_v25, %v1143_v27 }
 0x3a9   :  { %1832 = vmatprep.subr.msk.bf16.mxu1 %vm1831_vm9, %v1830_v29 }
 0x3aa   :  { %1835 = vmatpush3.bf16.msk.msra.mxu1 %vm1831_vm9, %v1830_v29 }
 0x3ab   :  { %1836 = vmatprep.subr.bf16.mxu1 %v1973_v55 }
 0x3ad   :  { %1671 = vmatmul.mubr.msk.f32.vlgmr.msra.gmra.mrb[12].mxu1 %vm1149_vm7, %v1146_v30 }
 0x3ae   :  { %1677 = vmatprep.mubr.msk.f32.mxu1 %vm1980_vm10, %v1974_v28  ;;  %v1235_v28 = vld [vmem:[%s2477_s8] sm:$0x1]  ;;  %s1953_s8 = scalar_lea.vmem %s1330_s2, 32 }
 0x3af   :  { %p1955_p2 = scmp.lt.s32.totalorder %s1953_s8, %s1949_s9 }
 0x3b1   :  { %p1956_p3 = por %p1955_p2, %p1954_p1 }
 0x3b3   :  { %p1957_p4 = pnand %p1956_p3, %p1950_p0 }
 0x480   :  { %v1672_v33 = vpop.f32.mrb[12].mxu1 }
 0x481   :  { %v1232_v34 = vadd.f32 %v1672_v33, %v1148_v31  ;;  %v1226_v35 = vpop.f32.mrb[13].mxu1 }
 0x482   :  { %v1227_v36 = vadd.f32 %v1226_v35, %v1147_v32 }
 0x484   :  { %v1837_v55 = vpack.c.bf16 %v1232_v34, %v1227_v36 }
 0x486   :  { %1839 = vmatpush3.bf16.msk.msra.mxu1 %vm1838_vm12, %v1837_v55 }
 0x489   :  { %1678 = vmatmul.mubr.msk.f32.vlgmr.msra.gmra.mrb[14].mxu1 %vm1237_vm13, %v1235_v28 }
 0x55c   :  { %v1311_v38 = vpop.f32.mrb[14].mxu1 }
 0x55d   :  { %v1312_v39 = vadd.f32 %v1311_v38, %v1236_v37  ;;  %v1679_v40 = vpop.f32.mrb[15].mxu1 }
 0x55f   :  { %v1403_v41 = vmul.f32 -1.442695, %v1312_v39 }
 0x561   :  { %1945 = vpow2.f32 %v1403_v41 }
 0x56b   :  { %v1946_v42 = vpop.eup %1945 }
 0x56c   :  { %v1318_v43 = vadd.f32 1.0, %v1946_v42 }
 0x56e   :  { %1947 = vrcp.f32 %v1318_v43 }
 0x578   :  { %v1948_v44 = vpop.eup %1947 }
 0x579   :  { %1322 = vst.msk [vmem:[#allocation4] sm:$0x1] %vm1321_vm14, %v1948_v44 }
 0x57a   :  { %1960 = shalt.err (!%p1957_p4)
}
 0x57b   :  { %s1961_s26 = scalar_lea.hbm %s2478_s10, 16 }
 0x57c   :  { %p1962_p5 = scmp.ne.s32.totalorder %s2478_s10, %s1961_s26  ;;  %p1965_p6 = scmp.lt.u32.totalorder %s1961_s26, %s2478_s10 }
 0x57e   :  { %p1967_p7 = pnand %p1965_p6, %p1962_p5 }
 0x580   :  { %1970 = shalt.err (!%p1967_p7)
}
 0x581   :  { %1332 = dma.vmem_to_hbm [thread:$0]  %s1330_s2, 16, %s2478_s10, [#allocation5]  }
 0x582   :  { %1971 = dma.done.wait [#allocation5], 16  }
 0x583   :  { %1972 = vsyncadd [#allocation5], 4294967280 }
 0x584   :  { %1336 = vsyncpa [#allocation5], 1 }

</bundles_post_ra>
